<compile_context>
chip_gen: v7x
topology: tpu7x:2x2x1
jax: 0.10.0
libtpu: 0.0.40
codegen_flags: <defaults>
</compile_context>

<pallas_src>
import functools

import jax
import jax.numpy as jnp
import numpy as np
from jax.experimental import pallas as pl
from jax.experimental.pallas import tpu as pltpu


# ----------------------------------------------------------------------------
# Kernel 1: masked pooling of embed and of the inf-normalized initial noise.
#   P0[b,:] = sum_s mask[b,s] * embed[b,s,:]           / msum[b]
#   Q0[b,:] = sum_s mask[b,s] * inf_norm(noise[b,s,:]) / msum[b]
#   inf_norm(v) = v / (max|v| + 1e-8)  (== VATLoss.get_norm, norm_type='inf')
#   msum[b]   = max(sum_s mask[b,s], 1)
# ----------------------------------------------------------------------------
def _pool_kernel(mask_ref, emb_ref, noise_ref, p_ref, q_ref, ms_acc):
    s = pl.program_id(1)

    @pl.when(s == 0)
    def _():
        p_ref[...] = jnp.zeros_like(p_ref)
        q_ref[...] = jnp.zeros_like(q_ref)
        ms_acc[...] = jnp.zeros_like(ms_acc)

    m = mask_ref[...]                                    # (1, s_tile)
    e = emb_ref[...]                                     # (s_tile, H)
    nz = noise_ref[...]                                  # (s_tile, H)
    nhat = nz / (jnp.max(jnp.abs(nz), axis=-1, keepdims=True) + 1e-8)

    # masked pooling on the MXU: (1, s_tile) @ (s_tile, H) -> (1, H)
    p_ref[...] += jnp.dot(m, e, preferred_element_type=jnp.float32)
    q_ref[...] += jnp.dot(m, nhat, preferred_element_type=jnp.float32)
    ms_acc[...] += jnp.sum(m, axis=-1, keepdims=True)    # (1, 1)

    @pl.when(s == pl.num_programs(1) - 1)
    def _():
        inv = 1.0 / jnp.maximum(ms_acc[...], 1.0)        # (1, 1)
        p_ref[...] *= inv
        q_ref[...] *= inv


def _pick_s_tile(S, H):
    """Largest seq tile that divides S, keeps a [s_tile, H] f32 block <= ~2 MiB,
    and respects the (8,128) block rules (tile == S or a multiple of 128)."""
    max_block_bytes = 2 * 1024 * 1024
    cap = max(128, (max_block_bytes // (H * 4)) // 128 * 128)
    if S <= cap:
        return S
    t = cap
    while t >= 128:
        if S % t == 0:
            return t
        t -= 128
    # TODO(synk): ragged S with no 128-multiple divisor falls back to one full-S block.
    return S


# ----------------------------------------------------------------------------
# Kernel 2: head forward + analytic VAT power iteration + KL, all in VMEM.
#   grad wrt noise is rank-1 per row: g[b,s,:] = scale[b,s] * gp[b,:], so its
#   inf-normalized form is coef[b,s] * gp[b,:] with
#     scale = xi*mask/msum,  coef = scale / (scale*max_h|gp| + 1e-8)
#   and the pooled (normalized) noise needed by the next forward pass is
#     D_new[b,:] = (sum_s mask*coef / msum) * gp[b,:]
# ----------------------------------------------------------------------------
def _vat_head_kernel(mask_ref, tgt_ref, w_ref, b_ref, p0_ref, q0_ref, loss_ref,
                     *, k, xi, eps, alpha):
    mask = mask_ref[...]                                 # (B, S)
    tgt = tgt_ref[...]                                   # (B, C)
    W = w_ref[...]                                       # (H, C)
    bias = b_ref[...]                                    # (1, C)
    P0 = p0_ref[...]                                     # (B, H) pooled embed
    D = q0_ref[...]                                      # (B, H) pooled normalized noise
    Bn = P0.shape[0]

    msum = jnp.maximum(jnp.sum(mask, axis=-1, keepdims=True), 1.0)   # (B, 1)
    scale = (xi * mask) / msum                                       # (B, S)

    def _softmax(x):
        xm = jnp.max(x, axis=-1, keepdims=True)
        ex = jnp.exp(x - xm)
        return ex / jnp.sum(ex, axis=-1, keepdims=True)

    def _log_softmax(x):
        xm = jnp.max(x, axis=-1, keepdims=True)
        return x - xm - jnp.log(jnp.sum(jnp.exp(x - xm), axis=-1, keepdims=True))

    p_tgt = _softmax(tgt)                                # (B, C)
    log_p_tgt = _log_softmax(tgt)                        # (B, C)
    Wt = W.T                                             # (C, H), in-VMEM transpose

    for _ in range(k):                                   # k static -> unrolled
        pooled = P0 + xi * D                                             # (B, H)
        logits = jnp.dot(pooled, W, preferred_element_type=jnp.float32) + bias
        g_logits = (_softmax(logits) - p_tgt) / Bn                       # dKL/dlogits
        gp = jnp.dot(g_logits, Wt, preferred_element_type=jnp.float32)   # dKL/dpooled (B, H)
        gmax = jnp.max(jnp.abs(gp), axis=-1, keepdims=True)              # (B, 1)
        coef = scale / (scale * gmax + 1e-8)                             # (B, S)
        cc = jnp.sum(mask * coef, axis=-1, keepdims=True) / msum         # (B, 1)
        D = cc * gp                                                      # (B, H)

    pooled = P0 + eps * D
    logits = jnp.dot(pooled, W, preferred_element_type=jnp.float32) + bias
    log_q = _log_softmax(logits)
    per_row = jnp.sum(p_tgt * (log_p_tgt - log_q), axis=-1, keepdims=True)  # (B, 1)
    loss_ref[...] = jnp.sum(per_row, axis=0, keepdims=True) * (alpha / Bn)  # (1, 1)


# ----------------------------------------------------------------------------
# VATLoss.forward
# ----------------------------------------------------------------------------
@functools.partial(jax.jit, static_argnames=("k", "alpha", "xi", "eps"))
def vat_loss(attention_mask, logits, embed, W, b, noise,
             k=1, alpha=1.0, xi=1e-6, eps=2.0):
    B, S, H = embed.shape
    s_tile = _pick_s_tile(S, H)
    mask_f = attention_mask.astype(jnp.float32)
    mask_r = mask_f.reshape(B, 1, S)                     # rank-3 so blocks stay (8,128)-legal

    p0_3, q0_3 = pl.pallas_call(
        _pool_kernel,
        out_shape=(jax.ShapeDtypeStruct((B, 1, H), jnp.float32),
                   jax.ShapeDtypeStruct((B, 1, H), jnp.float32)),
        grid=(B, S // s_tile),
        in_specs=[
            pl.BlockSpec((None, 1, s_tile), lambda bi, si: (bi, 0, si)),
            pl.BlockSpec((None, s_tile, H), lambda bi, si: (bi, si, 0)),
            pl.BlockSpec((None, s_tile, H), lambda bi, si: (bi, si, 0)),
        ],
        out_specs=[
            pl.BlockSpec((None, 1, H), lambda bi, si: (bi, 0, 0)),
            pl.BlockSpec((None, 1, H), lambda bi, si: (bi, 0, 0)),
        ],
        scratch_shapes=[pltpu.VMEM((1, 1), jnp.float32)],
        compiler_params=pltpu.CompilerParams(
            dimension_semantics=("parallel", "arbitrary"),
            vmem_limit_bytes=32 * 1024 * 1024),
    )(mask_r, embed, noise)

    kern = functools.partial(_vat_head_kernel, k=k, xi=xi, eps=eps, alpha=alpha)
    loss = pl.pallas_call(
        kern,
        out_shape=jax.ShapeDtypeStruct((1, 1), jnp.float32),
        in_specs=[pl.BlockSpec(memory_space=pltpu.MemorySpace.VMEM)] * 6,
        out_specs=pl.BlockSpec(memory_space=pltpu.MemorySpace.VMEM),
    )(mask_f, logits, W, b, p0_3.reshape(B, H), q0_3.reshape(B, H))
    return loss[0, 0]


# ----------------------------------------------------------------------------
# pure-JAX reference (uses jax.grad) for correctness checking
# ----------------------------------------------------------------------------
def ref_vat_loss(mask, logits, embed, W, b, noise,
                 k=1, alpha=1.0, xi=1e-6, eps=2.0):
    def norm(g):
        return g / (jnp.max(jnp.abs(g), axis=-1, keepdims=True) + 1e-8)

    def model(e):
        msum = jnp.maximum(jnp.sum(mask, axis=-1, keepdims=True), 1.0)
        pooled = jnp.sum(mask[:, :, None] * e, axis=1) / msum
        return pooled @ W + b

    def kl(i, t):
        return jnp.sum(
            jax.nn.softmax(t, -1)
            * (jax.nn.log_softmax(t, -1) - jax.nn.log_softmax(i, -1))
        ) / i.shape[0]

    n = norm(noise)
    for _ in range(k):
        g = jax.grad(lambda nz: kl(model(embed + xi * nz), logits))(n)
        n = norm(g)
    return kl(model(embed + eps * n), logits) * alpha


if __name__ == "__main__":
    B, S, H, C = 2, 8, 32, 4
    key = jax.random.PRNGKey(0)
    k_emb, k_log, k_w, k_b, k_n = jax.random.split(key, 5)

    embed = jax.random.normal(k_emb, (B, S, H), dtype=jnp.float32)   # captured by hook in torch
    logits = jax.random.normal(k_log, (B, C), dtype=jnp.float32)     # original-model logits
    W = jax.random.normal(k_w, (H, C), dtype=jnp.float32) * 0.1      # synthetic head weight
    b = jax.random.normal(k_b, (1, C), dtype=jnp.float32) * 0.1      # synthetic head bias
    noise0 = jax.random.normal(k_n, (B, S, H), dtype=jnp.float32)    # torch.randn equivalent
    attention_mask = jnp.array(
        [[1, 1, 1, 1, 1, 1, 1, 1],
         [1, 1, 1, 1, 1, 0, 0, 0]], dtype=jnp.float32)

    loss = vat_loss(attention_mask, logits, embed, W, b, noise0,
                    k=1, alpha=1.0, xi=1e-6, eps=2.0)
    loss = jax.block_until_ready(loss)

    ref = ref_vat_loss(attention_mask, logits, embed, W, b, noise0,
                       k=1, alpha=1.0, xi=1e-6, eps=2.0)
    np.testing.assert_allclose(float(loss), float(ref), rtol=2e-3, atol=1e-5)

    print("KERNEL_OK")
</pallas_src>

<mosaic_0001>
module attributes {stable_mosaic.version = 11 : i64} {
  func.func @_pool_kernel(%arg0: i32, %arg1: i32, %arg2: memref<1x1x8xf32, #tpu.memory_space<vmem>>, %arg3: memref<1x8x32xf32, #tpu.memory_space<vmem>>, %arg4: memref<1x8x32xf32, #tpu.memory_space<vmem>>, %arg5: memref<1x1x32xf32, #tpu.memory_space<vmem>>, %arg6: memref<1x1x32xf32, #tpu.memory_space<vmem>>, %arg7: memref<1x1xf32, #tpu.memory_space<vmem>>) attributes {dimension_semantics = [#tpu.dimension_semantics<parallel>, #tpu.dimension_semantics<arbitrary>], iteration_bounds = array<i64: 2, 1>, scalar_prefetch = 0 : i64, scratch_operands = 1 : i64, tpu.core_type = #tpu.core_type<tc>, window_params = [{transform_indices = @transform_0, window_bounds = array<i64: 1, 1, 8>}, {transform_indices = @transform_1, window_bounds = array<i64: 1, 8, 32>}, {transform_indices = @transform_2, window_bounds = array<i64: 1, 8, 32>}, {transform_indices = @transform_3, window_bounds = array<i64: 1, 1, 32>}, {transform_indices = @transform_4, window_bounds = array<i64: 1, 1, 32>}]} {
    %c0_i32 = arith.constant 0 : i32
    %0 = arith.cmpi eq, %arg1, %c0_i32 : i32
    %1 = arith.extui %0 : i1 to i32
    %c0_i32_0 = arith.constant 0 : i32
    %2 = arith.cmpi ne, %1, %c0_i32_0 : i32
    scf.if %2 {
      %cst_31 = arith.constant 0.000000e+00 : f32
      %38 = vector.broadcast %cst_31 : f32 to vector<1x32xf32>
      %c0_32 = arith.constant 0 : index
      %c0_33 = arith.constant 0 : index
      %c0_34 = arith.constant 0 : index
      %39 = vector.load %arg5[%c0_32, %c0_33, %c0_34] : memref<1x1x32xf32, #tpu.memory_space<vmem>>, vector<1x1x32xf32>
      %40 = vector.shape_cast %39 : vector<1x1x32xf32> to vector<1x32xf32>
      %41 = vector.shape_cast %38 : vector<1x32xf32> to vector<1x1x32xf32>
      tpu.vector_store %arg5[%c0_32, %c0_33, %c0_34], %41 {strides = array<i32>} : memref<1x1x32xf32, #tpu.memory_space<vmem>>, vector<1x1x32xf32>,
      %cst_35 = arith.constant 0.000000e+00 : f32
      %42 = vector.broadcast %cst_35 : f32 to vector<1x32xf32>
      %c0_36 = arith.constant 0 : index
      %c0_37 = arith.constant 0 : index
      %c0_38 = arith.constant 0 : index
      %43 = vector.load %arg6[%c0_36, %c0_37, %c0_38] : memref<1x1x32xf32, #tpu.memory_space<vmem>>, vector<1x1x32xf32>
      %44 = vector.shape_cast %43 : vector<1x1x32xf32> to vector<1x32xf32>
      %45 = vector.shape_cast %42 : vector<1x32xf32> to vector<1x1x32xf32>
      tpu.vector_store %arg6[%c0_36, %c0_37, %c0_38], %45 {strides = array<i32>} : memref<1x1x32xf32, #tpu.memory_space<vmem>>, vector<1x1x32xf32>,
      %cst_39 = arith.constant 0.000000e+00 : f32
      %46 = vector.broadcast %cst_39 : f32 to vector<1x1xf32>
      %c0_40 = arith.constant 0 : index
      %c0_41 = arith.constant 0 : index
      %47 = vector.load %arg7[%c0_40, %c0_41] : memref<1x1xf32, #tpu.memory_space<vmem>>, vector<1x1xf32>
      tpu.vector_store %arg7[%c0_40, %c0_41], %46 {strides = array<i32>} : memref<1x1xf32, #tpu.memory_space<vmem>>, vector<1x1xf32>,
    } else {
    }
    %c0 = arith.constant 0 : index
    %c0_1 = arith.constant 0 : index
    %c0_2 = arith.constant 0 : index
    %3 = vector.load %arg2[%c0, %c0_1, %c0_2] : memref<1x1x8xf32, #tpu.memory_space<vmem>>, vector<1x1x8xf32>
    %4 = vector.shape_cast %3 : vector<1x1x8xf32> to vector<1x8xf32>
    %c0_3 = arith.constant 0 : index
    %c0_4 = arith.constant 0 : index
    %c0_5 = arith.constant 0 : index
    %5 = vector.load %arg3[%c0_3, %c0_4, %c0_5] : memref<1x8x32xf32, #tpu.memory_space<vmem>>, vector<1x8x32xf32>
    %6 = vector.shape_cast %5 : vector<1x8x32xf32> to vector<8x32xf32>
    %c0_6 = arith.constant 0 : index
    %c0_7 = arith.constant 0 : index
    %c0_8 = arith.constant 0 : index
    %7 = vector.load %arg4[%c0_6, %c0_7, %c0_8] : memref<1x8x32xf32, #tpu.memory_space<vmem>>, vector<1x8x32xf32>
    %8 = vector.shape_cast %7 : vector<1x8x32xf32> to vector<8x32xf32>
    %9 = math.absf %8 : vector<8x32xf32>
    %cst = arith.constant dense<0xFF800000> : vector<8xf32>
    %10 = vector.multi_reduction <maximumf>, %9, %cst [1] : vector<8x32xf32> to vector<8xf32>
    %11 = vector.shape_cast %10 : vector<8xf32> to vector<8x1xf32>
    %cst_9 = arith.constant 9.99999993E-9 : f32
    %12 = vector.broadcast %cst_9 : f32 to vector<8x1xf32>
    %13 = arith.addf %11, %12 : vector<8x1xf32>
    %14 = vector.broadcast %13 : vector<8x1xf32> to vector<8x32xf32>
    %15 = arith.divf %8, %14 : vector<8x32xf32>
    %c0_10 = arith.constant 0 : index
    %c0_11 = arith.constant 0 : index
    %c0_12 = arith.constant 0 : index
    %16 = vector.load %arg5[%c0_10, %c0_11, %c0_12] : memref<1x1x32xf32, #tpu.memory_space<vmem>>, vector<1x1x32xf32>
    %17 = vector.shape_cast %16 : vector<1x1x32xf32> to vector<1x32xf32>
    %cst_13 = arith.constant dense<0.000000e+00> : vector<1x32xf32>
    %18 = tpu.matmul %4, %6, %cst_13 {dimension_numbers = #tpu.dot_dimension_numbers<[1], [0], [0], [1], [0, 0, 1, 1], [], []>} : vector<1x8xf32>, vector<8x32xf32>, vector<1x32xf32> -> vector<1x32xf32>
    %19 = arith.addf %17, %18 : vector<1x32xf32>
    %c0_14 = arith.constant 0 : index
    %c0_15 = arith.constant 0 : index
    %c0_16 = arith.constant 0 : index
    %20 = vector.load %arg5[%c0_14, %c0_15, %c0_16] : memref<1x1x32xf32, #tpu.memory_space<vmem>>, vector<1x1x32xf32>
    %21 = vector.shape_cast %20 : vector<1x1x32xf32> to vector<1x32xf32>
    %22 = vector.shape_cast %19 : vector<1x32xf32> to vector<1x1x32xf32>
    tpu.vector_store %arg5[%c0_14, %c0_15, %c0_16], %22 {strides = array<i32>} : memref<1x1x32xf32, #tpu.memory_space<vmem>>, vector<1x1x32xf32>,
    %c0_17 = arith.constant 0 : index
    %c0_18 = arith.constant 0 : index
    %c0_19 = arith.constant 0 : index
    %23 = vector.load %arg6[%c0_17, %c0_18, %c0_19] : memref<1x1x32xf32, #tpu.memory_space<vmem>>, vector<1x1x32xf32>
    %24 = vector.shape_cast %23 : vector<1x1x32xf32> to vector<1x32xf32>
    %cst_20 = arith.constant dense<0.000000e+00> : vector<1x32xf32>
    %25 = tpu.matmul %4, %15, %cst_20 {dimension_numbers = #tpu.dot_dimension_numbers<[1], [0], [0], [1], [0, 0, 1, 1], [], []>} : vector<1x8xf32>, vector<8x32xf32>, vector<1x32xf32> -> vector<1x32xf32>
    %26 = arith.addf %24, %25 : vector<1x32xf32>
    %c0_21 = arith.constant 0 : index
    %c0_22 = arith.constant 0 : index
    %c0_23 = arith.constant 0 : index
    %27 = vector.load %arg6[%c0_21, %c0_22, %c0_23] : memref<1x1x32xf32, #tpu.memory_space<vmem>>, vector<1x1x32xf32>
    %28 = vector.shape_cast %27 : vector<1x1x32xf32> to vector<1x32xf32>
    %29 = vector.shape_cast %26 : vector<1x32xf32> to vector<1x1x32xf32>
    tpu.vector_store %arg6[%c0_21, %c0_22, %c0_23], %29 {strides = array<i32>} : memref<1x1x32xf32, #tpu.memory_space<vmem>>, vector<1x1x32xf32>,
    %c0_24 = arith.constant 0 : index
    %c0_25 = arith.constant 0 : index
    %30 = vector.load %arg7[%c0_24, %c0_25] : memref<1x1xf32, #tpu.memory_space<vmem>>, vector<1x1xf32>
    %cst_26 = arith.constant dense<0.000000e+00> : vector<1xf32>
    %31 = vector.multi_reduction <add>, %4, %cst_26 [1] : vector<1x8xf32> to vector<1xf32>
    %32 = vector.shape_cast %31 : vector<1xf32> to vector<1x1xf32>
    %33 = arith.addf %30, %32 : vector<1x1xf32>
    %c0_27 = arith.constant 0 : index
    %c0_28 = arith.constant 0 : index
    %34 = vector.load %arg7[%c0_27, %c0_28] : memref<1x1xf32, #tpu.memory_space<vmem>>, vector<1x1xf32>
    tpu.vector_store %arg7[%c0_27, %c0_28], %33 {strides = array<i32>} : memref<1x1xf32, #tpu.memory_space<vmem>>, vector<1x1xf32>,
    %c0_i32_29 = arith.constant 0 : i32
    %35 = arith.cmpi eq, %arg1, %c0_i32_29 : i32
    %36 = arith.extui %35 : i1 to i32
    %c0_i32_30 = arith.constant 0 : i32
    %37 = arith.cmpi ne, %36, %c0_i32_30 : i32
    scf.if %37 {
      %c0_31 = arith.constant 0 : index
      %c0_32 = arith.constant 0 : index
      %38 = vector.load %arg7[%c0_31, %c0_32] : memref<1x1xf32, #tpu.memory_space<vmem>>, vector<1x1xf32>
      %cst_33 = arith.constant 1.000000e+00 : f32
      %39 = vector.broadcast %cst_33 : f32 to vector<1x1xf32>
      %40 = arith.maximumf %38, %39 : vector<1x1xf32>
      %cst_34 = arith.constant 1.000000e+00 : f32
      %41 = vector.broadcast %cst_34 : f32 to vector<1x1xf32>
      %42 = arith.divf %41, %40 : vector<1x1xf32>
      %c0_35 = arith.constant 0 : index
      %c0_36 = arith.constant 0 : index
      %c0_37 = arith.constant 0 : index
      %43 = vector.load %arg5[%c0_35, %c0_36, %c0_37] : memref<1x1x32xf32, #tpu.memory_space<vmem>>, vector<1x1x32xf32>
      %44 = vector.shape_cast %43 : vector<1x1x32xf32> to vector<1x32xf32>
      %45 = vector.broadcast %42 : vector<1x1xf32> to vector<1x32xf32>
      %46 = arith.mulf %44, %45 : vector<1x32xf32>
      %c0_38 = arith.constant 0 : index
      %c0_39 = arith.constant 0 : index
      %c0_40 = arith.constant 0 : index
      %47 = vector.load %arg5[%c0_38, %c0_39, %c0_40] : memref<1x1x32xf32, #tpu.memory_space<vmem>>, vector<1x1x32xf32>
      %48 = vector.shape_cast %47 : vector<1x1x32xf32> to vector<1x32xf32>
      %49 = vector.shape_cast %46 : vector<1x32xf32> to vector<1x1x32xf32>
      tpu.vector_store %arg5[%c0_38, %c0_39, %c0_40], %49 {strides = array<i32>} : memref<1x1x32xf32, #tpu.memory_space<vmem>>, vector<1x1x32xf32>,
      %c0_41 = arith.constant 0 : index
      %c0_42 = arith.constant 0 : index
      %c0_43 = arith.constant 0 : index
      %50 = vector.load %arg6[%c0_41, %c0_42, %c0_43] : memref<1x1x32xf32, #tpu.memory_space<vmem>>, vector<1x1x32xf32>
      %51 = vector.shape_cast %50 : vector<1x1x32xf32> to vector<1x32xf32>
      %52 = vector.broadcast %42 : vector<1x1xf32> to vector<1x32xf32>
      %53 = arith.mulf %51, %52 : vector<1x32xf32>
      %c0_44 = arith.constant 0 : index
      %c0_45 = arith.constant 0 : index
      %c0_46 = arith.constant 0 : index
      %54 = vector.load %arg6[%c0_44, %c0_45, %c0_46] : memref<1x1x32xf32, #tpu.memory_space<vmem>>, vector<1x1x32xf32>
      %55 = vector.shape_cast %54 : vector<1x1x32xf32> to vector<1x32xf32>
      %56 = vector.shape_cast %53 : vector<1x32xf32> to vector<1x1x32xf32>
      tpu.vector_store %arg6[%c0_44, %c0_45, %c0_46], %56 {strides = array<i32>} : memref<1x1x32xf32, #tpu.memory_space<vmem>>, vector<1x1x32xf32>,
    } else {
    }
    return
  }
  func.func @transform_0(%arg0: i32, %arg1: i32) -> (i32, i32, i32) {
    %c0_i32 = arith.constant 0 : i32
    %c0_i32_0 = arith.constant 0 : i32
    return %arg0, %c0_i32, %arg1 : i32, i32, i32
  }
  func.func @transform_1(%arg0: i32, %arg1: i32) -> (i32, i32, i32) {
    %c0_i32 = arith.constant 0 : i32
    %c0_i32_0 = arith.constant 0 : i32
    return %arg0, %arg1, %c0_i32 : i32, i32, i32
  }
  func.func @transform_2(%arg0: i32, %arg1: i32) -> (i32, i32, i32) {
    %c0_i32 = arith.constant 0 : i32
    %c0_i32_0 = arith.constant 0 : i32
    return %arg0, %arg1, %c0_i32 : i32, i32, i32
  }
  func.func @transform_3(%arg0: i32, %arg1: i32) -> (i32, i32, i32) {
    %c0_i32 = arith.constant 0 : i32
    %c0_i32_0 = arith.constant 0 : i32
    %c0_i32_1 = arith.constant 0 : i32
    return %arg0, %c0_i32, %c0_i32_0 : i32, i32, i32
  }
  func.func @transform_4(%arg0: i32, %arg1: i32) -> (i32, i32, i32) {
    %c0_i32 = arith.constant 0 : i32
    %c0_i32_0 = arith.constant 0 : i32
    %c0_i32_1 = arith.constant 0 : i32
    return %arg0, %c0_i32, %c0_i32_0 : i32, i32, i32
  }
}

module attributes {stable_mosaic.version = 11 : i64} {
  func.func @_vat_head_kernel(%arg0: memref<2x8xf32, #tpu.memory_space<vmem>>, %arg1: memref<2x4xf32, #tpu.memory_space<vmem>>, %arg2: memref<32x4xf32, #tpu.memory_space<vmem>>, %arg3: memref<1x4xf32, #tpu.memory_space<vmem>>, %arg4: memref<2x32xf32, #tpu.memory_space<vmem>>, %arg5: memref<2x32xf32, #tpu.memory_space<vmem>>, %arg6: memref<1x1xf32, #tpu.memory_space<vmem>>) attributes {dimension_semantics = [], scalar_prefetch = 0 : i64, scratch_operands = 0 : i64, tpu.core_type = #tpu.core_type<tc>} {
    %c0 = arith.constant 0 : index
    %c0_0 = arith.constant 0 : index
    %0 = vector.load %arg0[%c0, %c0_0] : memref<2x8xf32, #tpu.memory_space<vmem>>, vector<2x8xf32>
    %c0_1 = arith.constant 0 : index
    %c0_2 = arith.constant 0 : index
    %1 = vector.load %arg1[%c0_1, %c0_2] : memref<2x4xf32, #tpu.memory_space<vmem>>, vector<2x4xf32>
    %c0_3 = arith.constant 0 : index
    %c0_4 = arith.constant 0 : index
    %2 = vector.load %arg2[%c0_3, %c0_4] : memref<32x4xf32, #tpu.memory_space<vmem>>, vector<32x4xf32>
    %c0_5 = arith.constant 0 : index
    %c0_6 = arith.constant 0 : index
    %3 = vector.load %arg3[%c0_5, %c0_6] : memref<1x4xf32, #tpu.memory_space<vmem>>, vector<1x4xf32>
    %c0_7 = arith.constant 0 : index
    %c0_8 = arith.constant 0 : index
    %4 = vector.load %arg4[%c0_7, %c0_8] : memref<2x32xf32, #tpu.memory_space<vmem>>, vector<2x32xf32>
    %c0_9 = arith.constant 0 : index
    %c0_10 = arith.constant 0 : index
    %5 = vector.load %arg5[%c0_9, %c0_10] : memref<2x32xf32, #tpu.memory_space<vmem>>, vector<2x32xf32>
    %cst = arith.constant dense<0.000000e+00> : vector<2xf32>
    %6 = vector.multi_reduction <add>, %0, %cst [1] : vector<2x8xf32> to vector<2xf32>
    %7 = vector.shape_cast %6 : vector<2xf32> to vector<2x1xf32>
    %cst_11 = arith.constant 1.000000e+00 : f32
    %8 = vector.broadcast %cst_11 : f32 to vector<2x1xf32>
    %9 = arith.maximumf %7, %8 : vector<2x1xf32>
    %cst_12 = arith.constant 9.99999997E-7 : f32
    %10 = vector.broadcast %cst_12 : f32 to vector<2x8xf32>
    %11 = arith.mulf %10, %0 : vector<2x8xf32>
    %12 = vector.broadcast %9 : vector<2x1xf32> to vector<2x8xf32>
    %13 = arith.divf %11, %12 : vector<2x8xf32>
    %cst_13 = arith.constant dense<0xFF800000> : vector<2xf32>
    %14 = vector.multi_reduction <maximumf>, %1, %cst_13 [1] : vector<2x4xf32> to vector<2xf32>
    %15 = vector.shape_cast %14 : vector<2xf32> to vector<2x1xf32>
    %16 = vector.broadcast %15 : vector<2x1xf32> to vector<2x4xf32>
    %17 = arith.subf %1, %16 : vector<2x4xf32>
    %18 = math.exp %17 : vector<2x4xf32>
    %cst_14 = arith.constant dense<0.000000e+00> : vector<2xf32>
    %19 = vector.multi_reduction <add>, %18, %cst_14 [1] : vector<2x4xf32> to vector<2xf32>
    %20 = vector.shape_cast %19 : vector<2xf32> to vector<2x1xf32>
    %21 = vector.broadcast %20 : vector<2x1xf32> to vector<2x4xf32>
    %22 = arith.divf %18, %21 : vector<2x4xf32>
    %cst_15 = arith.constant dense<0xFF800000> : vector<2xf32>
    %23 = vector.multi_reduction <maximumf>, %1, %cst_15 [1] : vector<2x4xf32> to vector<2xf32>
    %24 = vector.shape_cast %23 : vector<2xf32> to vector<2x1xf32>
    %25 = vector.broadcast %24 : vector<2x1xf32> to vector<2x4xf32>
    %26 = arith.subf %1, %25 : vector<2x4xf32>
    %27 = vector.broadcast %24 : vector<2x1xf32> to vector<2x4xf32>
    %28 = arith.subf %1, %27 : vector<2x4xf32>
    %29 = math.exp %28 : vector<2x4xf32>
    %cst_16 = arith.constant dense<0.000000e+00> : vector<2xf32>
    %30 = vector.multi_reduction <add>, %29, %cst_16 [1] : vector<2x4xf32> to vector<2xf32>
    %31 = vector.shape_cast %30 : vector<2xf32> to vector<2x1xf32>
    %32 = math.log %31 : vector<2x1xf32>
    %33 = vector.broadcast %32 : vector<2x1xf32> to vector<2x4xf32>
    %34 = arith.subf %26, %33 : vector<2x4xf32>
    %35 = tpu.transpose %2, [1, 0] : vector<32x4xf32> -> vector<4x32xf32>
    %cst_17 = arith.constant 9.99999997E-7 : f32
    %36 = vector.broadcast %cst_17 : f32 to vector<2x32xf32>
    %37 = arith.mulf %36, %5 : vector<2x32xf32>
    %38 = arith.addf %4, %37 : vector<2x32xf32>
    %cst_18 = arith.constant dense<0.000000e+00> : vector<2x4xf32>
    %39 = tpu.matmul %38, %2, %cst_18 {dimension_numbers = #tpu.dot_dimension_numbers<[1], [0], [0], [1], [0, 0, 1, 1], [], []>} : vector<2x32xf32>, vector<32x4xf32>, vector<2x4xf32> -> vector<2x4xf32>
    %40 = vector.broadcast %3 : vector<1x4xf32> to vector<2x4xf32>
    %41 = arith.addf %39, %40 : vector<2x4xf32>
    %cst_19 = arith.constant dense<0xFF800000> : vector<2xf32>
    %42 = vector.multi_reduction <maximumf>, %41, %cst_19 [1] : vector<2x4xf32> to vector<2xf32>
    %43 = vector.shape_cast %42 : vector<2xf32> to vector<2x1xf32>
    %44 = vector.broadcast %43 : vector<2x1xf32> to vector<2x4xf32>
    %45 = arith.subf %41, %44 : vector<2x4xf32>
    %46 = math.exp %45 : vector<2x4xf32>
    %cst_20 = arith.constant dense<0.000000e+00> : vector<2xf32>
    %47 = vector.multi_reduction <add>, %46, %cst_20 [1] : vector<2x4xf32> to vector<2xf32>
    %48 = vector.shape_cast %47 : vector<2xf32> to vector<2x1xf32>
    %49 = vector.broadcast %48 : vector<2x1xf32> to vector<2x4xf32>
    %50 = arith.divf %46, %49 : vector<2x4xf32>
    %51 = arith.subf %50, %22 : vector<2x4xf32>
    %cst_21 = arith.constant 2.000000e+00 : f32
    %52 = vector.broadcast %cst_21 : f32 to vector<2x4xf32>
    %53 = arith.divf %51, %52 : vector<2x4xf32>
    %cst_22 = arith.constant dense<0.000000e+00> : vector<2x32xf32>
    %54 = tpu.matmul %53, %35, %cst_22 {dimension_numbers = #tpu.dot_dimension_numbers<[1], [0], [0], [1], [0, 0, 1, 1], [], []>} : vector<2x4xf32>, vector<4x32xf32>, vector<2x32xf32> -> vector<2x32xf32>
    %55 = math.absf %54 : vector<2x32xf32>
    %cst_23 = arith.constant dense<0xFF800000> : vector<2xf32>
    %56 = vector.multi_reduction <maximumf>, %55, %cst_23 [1] : vector<2x32xf32> to vector<2xf32>
    %57 = vector.shape_cast %56 : vector<2xf32> to vector<2x1xf32>
    %58 = vector.broadcast %57 : vector<2x1xf32> to vector<2x8xf32>
    %59 = arith.mulf %13, %58 : vector<2x8xf32>
    %cst_24 = arith.constant 9.99999993E-9 : f32
    %60 = vector.broadcast %cst_24 : f32 to vector<2x8xf32>
    %61 = arith.addf %59, %60 : vector<2x8xf32>
    %62 = arith.divf %13, %61 : vector<2x8xf32>
    %63 = arith.mulf %0, %62 : vector<2x8xf32>
    %cst_25 = arith.constant dense<0.000000e+00> : vector<2xf32>
    %64 = vector.multi_reduction <add>, %63, %cst_25 [1] : vector<2x8xf32> to vector<2xf32>
    %65 = vector.shape_cast %64 : vector<2xf32> to vector<2x1xf32>
    %66 = arith.divf %65, %9 : vector<2x1xf32>
    %67 = vector.broadcast %66 : vector<2x1xf32> to vector<2x32xf32>
    %68 = arith.mulf %67, %54 : vector<2x32xf32>
    %cst_26 = arith.constant 2.000000e+00 : f32
    %69 = vector.broadcast %cst_26 : f32 to vector<2x32xf32>
    %70 = arith.mulf %69, %68 : vector<2x32xf32>
    %71 = arith.addf %4, %70 : vector<2x32xf32>
    %cst_27 = arith.constant dense<0.000000e+00> : vector<2x4xf32>
    %72 = tpu.matmul %71, %2, %cst_27 {dimension_numbers = #tpu.dot_dimension_numbers<[1], [0], [0], [1], [0, 0, 1, 1], [], []>} : vector<2x32xf32>, vector<32x4xf32>, vector<2x4xf32> -> vector<2x4xf32>
    %73 = vector.broadcast %3 : vector<1x4xf32> to vector<2x4xf32>
    %74 = arith.addf %72, %73 : vector<2x4xf32>
    %cst_28 = arith.constant dense<0xFF800000> : vector<2xf32>
    %75 = vector.multi_reduction <maximumf>, %74, %cst_28 [1] : vector<2x4xf32> to vector<2xf32>
    %76 = vector.shape_cast %75 : vector<2xf32> to vector<2x1xf32>
    %77 = vector.broadcast %76 : vector<2x1xf32> to vector<2x4xf32>
    %78 = arith.subf %74, %77 : vector<2x4xf32>
    %79 = vector.broadcast %76 : vector<2x1xf32> to vector<2x4xf32>
    %80 = arith.subf %74, %79 : vector<2x4xf32>
    %81 = math.exp %80 : vector<2x4xf32>
    %cst_29 = arith.constant dense<0.000000e+00> : vector<2xf32>
    %82 = vector.multi_reduction <add>, %81, %cst_29 [1] : vector<2x4xf32> to vector<2xf32>
    %83 = vector.shape_cast %82 : vector<2xf32> to vector<2x1xf32>
    %84 = math.log %83 : vector<2x1xf32>
    %85 = vector.broadcast %84 : vector<2x1xf32> to vector<2x4xf32>
    %86 = arith.subf %78, %85 : vector<2x4xf32>
    %87 = arith.subf %34, %86 : vector<2x4xf32>
    %88 = arith.mulf %22, %87 : vector<2x4xf32>
    %cst_30 = arith.constant dense<0.000000e+00> : vector<2xf32>
    %89 = vector.multi_reduction <add>, %88, %cst_30 [1] : vector<2x4xf32> to vector<2xf32>
    %90 = vector.shape_cast %89 : vector<2xf32> to vector<2x1xf32>
    %cst_31 = arith.constant dense<0.000000e+00> : vector<1xf32>
    %91 = vector.multi_reduction <add>, %90, %cst_31 [0] : vector<2x1xf32> to vector<1xf32>
    %92 = vector.shape_cast %91 : vector<1xf32> to vector<1x1xf32>
    %cst_32 = arith.constant 5.000000e-01 : f32
    %93 = vector.broadcast %cst_32 : f32 to vector<1x1xf32>
    %94 = arith.mulf %92, %93 : vector<1x1xf32>
    %c0_33 = arith.constant 0 : index
    %c0_34 = arith.constant 0 : index
    %95 = vector.load %arg6[%c0_33, %c0_34] : memref<1x1xf32, #tpu.memory_space<vmem>>, vector<1x1xf32>
    tpu.vector_store %arg6[%c0_33, %c0_34], %94 {strides = array<i32>} : memref<1x1xf32, #tpu.memory_space<vmem>>, vector<1x1xf32>,
    return
  }
}

</mosaic_0001>

<bundles_post_ra>
// kernel: vat_loss.2
= control target key start
LH: loop header
LB: loop body
LE: loop exit
PB: predicated region body
PF: predicated region fallthrough
CT: control target
= control target key end

     0   :  { %10 = vsyncpa [#allocation4], 0  ;;  %s975_s0 = inlined_call_operand.vmem [shape: f32[2,1,8], index: 0, kind: input, shape index: {}]   ;;  %s976_s1 = inlined_call_operand.hbm [shape: f32[2,8,32], index: 1, kind: input, shape index: {}]   ;;  %s977_s2 = inlined_call_operand.vmem [shape: f32[2,8,32], index: 2, kind: input, shape index: {}]   ;;  %s978_s3 = inlined_call_operand.vmem [shape: f32[2,1,32], index: 3, kind: output, shape index: {0}]   ;;  %s979_s4 = inlined_call_operand.vmem [shape: f32[2,1,32], index: 4, kind: output, shape index: {1}]  }
   0x1   :  { %12 = vsyncpa [#allocation4 + $0x1], 0  ;;  %s811_s15 = smov 0   ;;  %s813_s16 = smov 0  }
   0x2   :  { %s815_s17 = smov 0   ;;  %s817_s18 = smov 0  }
   0x3   :  { %s819_s19 = smov 0   ;;  %s821_s20 = smov 0  }
   0x4 LB: > { %s609_s21 = sadd.s32 4294967295, %s780_s20   ;;  %s30_s22 = sadd.s32 1, %s776_s19  ;;  %s780_s20 = sphi %s821_s20, %s18_s20   ;;  %s776_s19 = sphi %s819_s19, %s989_s19   ;;  %s772_s18 = sphi %s817_s18, %s988_s18   ;;  %s768_s17 = sphi %s815_s17, %s987_s17   ;;  %s764_s16 = sphi %s813_s16, %s986_s16   ;;  %s760_s15 = sphi %s811_s15, %s985_s15  }
   0x5   : > { %p32_p0 = scmp.ge.s32.totalorder %s30_s22, 2  ;;  %s67_s23 = sadd.s32 1, %s768_s17 }
   0x6   : > { %p74_p1 = scmp.ne.s32.totalorder %s768_s17, %s764_s16  ;;  %p75_p2 = scmp.eq.s32.totalorder %s780_s20, 0 }
   0x7   : > { %s991_s22 = smov (%p32_p0, %s30_s22), 0  ;;  %p80_p4 = scmp.ne.s32.totalorder %s764_s16, %s760_s15 }
   0x8   : > { %p847_p3 = por %p75_p2, %p74_p1  ;;  %s62_s25 = ssub.s32 %s776_s19, %s991_s22 }
   0x9   : > { %p81_p5 = scmp.eq.s32.totalorder %s609_s21, 0  ;;  %p65_p6 = scmp.eq.s32.totalorder %s62_s25, 0 }
   0xa   : > { %p642_p8 = scmp.lt.s32.totalorder %s780_s20, 2  ;;  %s193_s28 = sand.u32 1, %s768_s17  }
   0xb   : > { %p854_p7 = por %p81_p5, %p80_p4  ;;  %s614_s29 = sshll.u32 %s776_s19, 7 }
   0xc   : > { %s860_s27 = scalar_select %p65_p6, %s768_s17, %s67_s23  }
   0xd   : > { %s613_s30 = sshll.u32 %s193_s28, 3  ;;  %s867_s7 = scalar_lea.hbm %s976_s1, %s614_s29 }
   0xe   : > { %s197_s8 = scalar_lea.vmem [#allocation3], %s613_s30  ;;  %p871_p9 = pnand %p642_p8, %p847_p3 }
   0xf   : > { %s205_s9 = sshll.u32 %s197_s8, 4  ;;  %s194_s11 = scalar_lea.sflag [#allocation4], %s193_s28  ;;  %s875_s9 = int_to_ptr.vmem [resolvable:$true] %s205_s9 }
  0x10   : > { %s700_s12 = scalar_lea.hbm %s867_s7, 128  ;;  %p702_p13 = pneg %p871_p9 }
  0x11   : > { %p701_p12 = scmp.ne.s32.totalorder %s867_s7, %s700_s12  ;;  %s705_s15 = scalar_lea.hbm %s976_s1, 256 }
  0x12   : > { %p706_p2 = scmp.lt.u32.totalorder %s867_s7, %s976_s1  ;;  %p707_p3 = scmp.lt.u32.totalorder %s705_s15, %s700_s12 }
  0x13   : > { %p703_p0 = pnand %p702_p13, %p701_p12  ;;  %p709_p5 = scmp.lt.u32.totalorder %s700_s12, %s867_s7 }
  0x14   : > { %p708_p4 = por %p707_p3, %p706_p2 }
  0x15   : > { %p704_p1 = pneg %p703_p0 }
  0x16   : > { %p710_p6 = por %p709_p5, %p708_p4 }
  0x18   : > { %p711_p8 = pnand %p710_p6, %p704_p1 }
  0x1a   : > { %714 = shalt.err (!%p711_p8)
}
  0x1b   : > { %s715_s24 = scalar_lea.vmem %s875_s9, 128  ;;  %s782_s25 = smov [#allocation3]  }
  0x1c   : > { %p716_p12 = scmp.ne.s32.totalorder %s875_s9, %s715_s24  ;;  %s720_s28 = sshll.u32 %s782_s25, 4  ;;  %s721_s28 = int_to_ptr.vmem [resolvable:$false] %s720_s28 }
  0x1d   : > { %s722_s29 = scalar_lea.vmem %s721_s28, 256  ;;  %p723_p11 = scmp.lt.s32.totalorder %s875_s9, %s721_s28 }
  0x1e   : > { %p718_p0 = pnand %p716_p12, %p702_p13  ;;  %p724_p2 = scmp.lt.s32.totalorder %s722_s29, %s715_s24 }
  0x20   : > { %p719_p10 = pneg %p718_p0  ;;  %p725_p3 = por %p724_p2, %p723_p11 }
  0x22   : > { %p726_p4 = pnand %p725_p3, %p719_p10 }
  0x24   : > { %729 = shalt.err (!%p726_p4)
}
  0x25   : > { %641 = dma.hbm_to_vmem [thread:$0]  (!%p871_p9), %s867_s7, 128, %s875_s9, %s194_s11  }
  0x26   : > { %p983_p1 = scmp.lt.s32.totalorder %s780_s20, 3  ;;  %p984_p5 = scmp.ge.s32.totalorder %s780_s20, 1 }
  0x28   : > { %p221_p13 = pnand %p984_p5, %p983_p1 }
  0x29   : > { %s226_s30 = sand.u32 (!%p221_p13), 1, %s764_s16  }
  0x2a   : > { %224 = sbr.rel (%p221_p13) target bundleno = 442 (0x1ba), region = 32  ;;  %s616_s5 = sshll.u32 (!%p221_p13), %s226_s30, 3 }
  0x2b   : > { %s227_s6 = scalar_lea.sflag (!%p221_p13), [#allocation4], %s226_s30  ;;  %s230_s8 = scalar_lea.vmem (!%p221_p13), [#allocation3], %s616_s5 }
  0x31   : > { %755 = dma.done.wait (%p854_p7), %s227_s6, 128  }
  0x32   : > { %757 = vsyncadd (%p854_p7), %s227_s6, 4294967168  ;;  %p269_p10 = scmp.lt.s32.totalorder %s772_s18, 1  ;;  %vm301_vm0 = vcmask 261120   ;;  %vm460_vm1 = vcmask 57344   ;;  %v298_v5 = vld [vmem:[%s230_s8] sm:$0xff]  ;;  %vm309_vm2 = vcmask 64512   ;;  %v480_v22 = vlaneseq }
  0x33   : > { %v783_v6 = vmov 0.0   ;;  %vm784_vm3 = vmmov 0   ;;  %vm295_vm4 = vcmask 0   ;;  %v785_v7 = vmov 0  }
  0x34   : > { %s993_s18 = smov (!%p269_p10, %s772_s18), 1  ;;  %626 = vmatprep.subr.mxu0 %v783_v6  ;;  %628 = vmatprep.mubr.msk.f32.mxu0 %vm784_vm3, %v783_v6  ;;  %296 = vst.msk [vmem:[#allocation2] sm:$0x1] %vm295_vm4, %v783_v6  ;;  %vm292_vm5 = vcmask 253952   ;;  %v481_v23 = vshrl.u32 %v480_v22, 7 }
  0x35   : > { %s617_s7 = sshll.u32 %s993_s18, 3  ;;  %s274_s14 = scalar_lea.vmem %s975_s0, %s993_s18  ;;  %627 = vmatpush3.msra.mxu0 %v298_v5  ;;  %631 = vmatprep.subr.mxu1 %v783_v6 }
  0x36   : > { %s281_s11 = scalar_lea.vmem %s977_s2, %s617_s7  ;;  %v297_v2 = vld [vmem:[%s274_s14] sm:$0x1]  ;;  %633 = vmatprep.mubr.msk.f32.mxu1 %vm784_vm3, %v783_v6  ;;  %694 = vset.pattern.permute.xlu1 %v785_v7  ;;  %s931_s21 = scalar_lea.vmem %s978_s3, %s993_s18  ;;  %v482_v24 = vsub.s32 0, %v481_v23 }
  0x37   : > { %v299_v0 = vld [vmem:[%s281_s11] sm:$0xff]  ;;  %v461_v4 = vsel %vm460_vm1, %v297_v2, 0.0  ;;  %629 = vmatmul.mubr.msk.f32.vlgmr.msra.gmra.mrb[0].mxu0 %vm309_vm2, %v297_v2  ;;  %695 = vset.pattern.permute.xlu0 %v785_v7  ;;  %293 = vst.msk [vmem:[%s931_s21] sm:$0x1] %vm292_vm5, %v783_v6  ;;  %s939_s25 = scalar_lea.vmem %s979_s4, %s993_s18 }
  0x38   : > { %v300_v1 = vand.u32 2147483647, %v299_v0  ;;  %294 = vst.msk [vmem:[%s939_s25] sm:$0x1] %vm292_vm5, %v783_v6 }
  0x3a   : > { %v302_v3 = vsel %vm301_vm0, %v300_v1, -inf }
  0x3b   : > { %303 = vmax.xlane.f32.xlu0 %v302_v3  ;;  %v459_v10 = vld [vmem:[#allocation2] sm:$0x1] }
  0x3e   : > { %v308_v18 = vld [vmem:[%s931_s21] sm:$0x1] }
  0x3f   : > { %462 = vadd.xlane.f32.xlu0 %v461_v4  ;;  %v386_v29 = vld [vmem:[%s939_s25] sm:$0x1] }
  0xc8   : > { %v304_v8 = vpop.xlane.xlu0 %303 }
  0xc9   : > { %v305_v9 = vadd.f32 1e-08, %v304_v8 }
  0xcb   : > { %696 = vrcp.f32 %v305_v9 }
  0xcc   : > { %v463_v11 = vpop.xlane.xlu0 %462 }
  0xcd   : > { %v464_v12 = vadd.f32 %v463_v11, %v459_v10 }
  0xcf   : > { %466 = vst.msk [vmem:[#allocation2] sm:$0x1] %vm295_vm4, %v464_v12 }
  0xd5   : > { %v697_v13 = vpop.eup %696 }
  0xd6   : > { %v307_v14 = vmul.f32 %v697_v13, %v299_v0  ;;  %v470_v15 = vld [vmem:[#allocation2] sm:$0x1] }
  0xd7   : > { %v471_v16 = vmax.f32 %v470_v15, 1.0 }
  0xd8   : > { %632 = vmatpush3.msra.mxu1 %v307_v14 }
  0xd9   : > { %634 = vmatmul.mubr.msk.f32.vlgmr.msra.gmra.mrb[0].mxu1 %vm309_vm2, %v297_v2  ;;  %698 = vrcp.f32 %v471_v16 }
  0xe3   : > { %v699_v17 = vpop.eup %698 }
  0xe4   : > { %477 = vperm.xlu1 %694, %v699_v17  }
 0x10a   : > { %v379_v19 = vpop.f32.mrb[0].mxu0 }
 0x10b   : > { %v383_v20 = vadd.f32 %v379_v19, %v308_v18  ;;  %v630_v21 = vpop.f32.mrb[1].mxu0 }
 0x10d   : > { %385 = vst.msk [vmem:[%s931_s21] sm:$0x1] %vm292_vm5, %v383_v20 }
 0x114   : > { %v474_v26 = vld [vmem:[%s931_s21] sm:$0x1] }
 0x163   : > { %v478_v25 = vpop.permute.xlu1 %477 }
 0x164   : > { %v483_v27 = vrot.slane %v478_v25, %v482_v24 }
 0x166   : > { %v484_v28 = vmul.f32 %v483_v27, %v474_v26 }
 0x168   : > { %485 = vst.msk [vmem:[%s931_s21] sm:$0x1] %vm292_vm5, %v484_v28 }
 0x1ac   : > { %v453_v30 = vpop.f32.mrb[0].mxu1 }
 0x1ad   : > { %v457_v31 = vadd.f32 %v453_v30, %v386_v29  ;;  %v635_v32 = vpop.f32.mrb[1].mxu1 }
 0x1af   : > { %458 = vst.msk [vmem:[%s939_s25] sm:$0x1] %vm292_vm5, %v457_v31 }
 0x1b6   : > { %v486_v33 = vld [vmem:[%s939_s25] sm:$0x1] }
 0x1b7   : > { %v487_v34 = vmul.f32 %v486_v33, %v483_v27 }
 0x1b9   : > { %488 = vst.msk [vmem:[%s939_s25] sm:$0x1] %vm292_vm5, %v487_v34 }
 0x1ba PF: > { %s18_s20 = sadd.s32 1, %s780_s20   ;;  %s985_s15 = smov %s764_s16 }
 0x1bb   : > { %p15_p7 = scmp.ge.s32.totalorder %s18_s20, 4   ;;  %s986_s16 = smov %s768_s17 }
 0x1bc   : > { %s987_s17 = smov %s860_s27  ;;  %s988_s18 = smov %s776_s19 }
 0x1bd   : > { %s989_s19 = smov %s991_s22  ;;  %17 = sbr.rel (!%p15_p7) target bundleno = 4 (0x4), region = 98 }
 0x1c4   :  { %518 = vsyncpa [#allocation4], 1 }
 0x1c5   :  { %520 = vsyncpa [#allocation4 + $0x1], 1 }

// kernel: vat_loss.3
= control target key start
LH: loop header
LB: loop body
LE: loop exit
PB: predicated region body
PF: predicated region fallthrough
CT: control target
= control target key end

     0   :  { %v492_v3 = vmov 0.0|0.0   ;;  %vm493_vm0 = vmmov 0   ;;  %v494_v6 = vmov 0.0   ;;  %vm41_vm1 = vcmask 25600   ;;  %s595_s0 = inlined_call_operand.vmem [shape: f32[2,8], index: 0, kind: input, shape index: {}]   ;;  %s596_s1 = inlined_call_operand.vmem [shape: f32[2,4], index: 1, kind: input, shape index: {}]   ;;  %s597_s2 = inlined_call_operand.vmem [shape: f32[32,4], index: 2, kind: input, shape index: {}]   ;;  %s598_s3 = inlined_call_operand.vmem [shape: f32[1,4], index: 3, kind: input, shape index: {}]   ;;  %s599_s4 = inlined_call_operand.vmem [shape: f32[2,32], index: 4, kind: input, shape index: {}]   ;;  %s600_s5 = inlined_call_operand.vmem [shape: f32[2,32], index: 5, kind: input, shape index: {}]   ;;  %s601_s6 = inlined_call_operand.hbm [shape: f32[1,1], index: 6, kind: output, shape index: {}]  }
   0x1   :  { %v26_v0 = vld [vmem:[%s597_s2] sm:$0xff]  ;;  %v27_v1 = vld [vmem:[%s597_s2 + $0x8] sm:$0xff]  ;;  %v28_v2 = vld [vmem:[%s597_s2 + $0x10] sm:$0xff]  ;;  %426 = vmatprep.subr.bf16.mxu0 %v492_v3  ;;  %401 = vmatprep.mubr.msk.f32.mxu0 %vm493_vm0, %v494_v6 }
   0x2   :  { %v427_v4 = vpack.c.bf16 %v27_v1, %v26_v0  ;;  %v29_v5 = vld [vmem:[%s597_s2 + $0x18] sm:$0xff]  ;;  %v32_v7 = vld [vmem:[%s600_s5] sm:$0x3]  ;;  %432 = vmatprep.subr.bf16.mxu1 %v492_v3  ;;  %412 = vmatprep.mubr.msk.f32.mxu1 %vm493_vm0, %v494_v6 }
   0x3   :  { %v56_v8 = vmul.f32 1e-06, %v32_v7  ;;  %v25_v9 = vld [vmem:[%s596_s1] sm:$0x3]  ;;  %v430_v10 = vpack.c.bf16 %v29_v5, %v28_v2 }
   0x4   :  { %428 = vmatpush3.bf16.msra.mxu0 %v427_v4  ;;  %v554_v11 = vld [vmem:[%s599_s4] sm:$0x3]  ;;  %v42_v12 = vsel %vm41_vm1, %v25_v9, -inf }
   0x5   :  { %11 = vsyncpa [#allocation3], 0  ;;  %429 = vmatprep.subr.bf16.mxu0 %v492_v3  ;;  %43 = vmax.xlane.f32.xlu0 %v42_v12  ;;  %v57_v13 = vadd.f32 %v56_v8, %v554_v11  ;;  %vm64_vm2 = vcmask 261120   ;;  %v370_v19 = vld [vmem:[%s598_s3] ss:$0 sm:$0xff]  ;;  %vm152_vm3 = vcmask 31744  }
   0x6   :  { %vm434_vm4 = vmpackc.low %vm152_vm3, %vm152_vm3  ;;  %v24_v29 = vld [vmem:[%s595_s0] sm:$0x3]  ;;  %vm33_vm5 = vcmask 58368   ;;  %vm239_vm6 = vcmask 254976   ;;  %vm345_vm7 = vcmask 1041408   ;;  %s495_s0 = smov [#allocation2]  }
   0x7   :  { %435 = vmatpush3.bf16.xpose.msk.msra.mxu1 %vm434_vm4, %v427_v4  ;;  %v34_v30 = vsel %vm33_vm5, %v24_v29, 0.0  ;;  %v38_v45 = vmul.f32 1e-06, %v24_v29  ;;  %s362_s10 = sshll.u32 %s495_s0, 4  ;;  %vm354_vm8 = vcmask 0   ;;  %s363_s10 = int_to_ptr.vmem [resolvable:$true] %s362_s10 }
   0x8   :  { %431 = vmatpush3.bf16.msra.mxu0 %v430_v10  ;;  %436 = vmatprep.subr.bf16.mxu1 %v492_v3  ;;  %s468_s11 = scalar_lea.vmem %s363_s10, 16  ;;  %s472_s12 = scalar_lea.vmem %s363_s10, 32 }
   0x9   :  { %440 = vmatprep.subr.bf16.mxu0 %v492_v3  ;;  %p469_p0 = scmp.ne.s32.totalorder %s363_s10, %s468_s11  ;;  %p473_p1 = scmp.lt.s32.totalorder %s363_s10, %s363_s10 }
   0xa   :  { %p474_p2 = scmp.lt.s32.totalorder %s472_s12, %s468_s11 }
   0xb   :  { %402 = vmatmul.mubr.msk.f32.vlgmr.msra.gmra.mrb[0].mxu0 %vm64_vm2, %v57_v13 }
   0xc   :  { %442 = vmatpush3.bf16.msra.mxu0 %v427_v4  ;;  %423 = vmatprep.mubr.msk.f32.mxu0 %vm493_vm0, %v494_v6  ;;  %p475_p3 = por %p474_p2, %p473_p1 }
   0xd   :  { %443 = vmatprep.subr.bf16.mxu0 %v492_v3 }
   0xe   :  { %p476_p4 = pnand %p475_p3, %p469_p0 }
   0xf   :  { %439 = vmatpush3.bf16.xpose.msk.msra.mxu1 %vm434_vm4, %v430_v10 }
  0x10   :  { %445 = vmatpush3.bf16.msra.mxu0 %v430_v10 }
  0x92   :  { %v44_v14 = vpop.xlane.xlu0 %43 }
  0x93   :  { %v560_v15 = vsub.f32 %v25_v9, %v44_v14 }
  0x95   :  { %v46_v16 = vmul.f32 1.442695, %v560_v15 }
  0x97   :  { %450 = vpow2.f32 %v46_v16 }
  0xa1   :  { %v451_v17 = vpop.eup %450 }
  0xa2   :  { %v48_v18 = vsel %vm41_vm1, %v451_v17, 0.0 }
  0xa3   :  { %49 = vadd.xlane.f32.xlu1 %v48_v18 }
  0xde   :  { %v134_v20 = vpop.f32.mrb[0].mxu0 }
  0xdf   :  { %v135_v21 = vadd.f32 %v370_v19, %v134_v20  ;;  %v403_v22 = vpop.f32.mrb[1].mxu0 }
  0xe1   :  { %v138_v23 = vsel %vm41_vm1, %v135_v21, -inf }
  0xe2   :  { %139 = vmax.xlane.f32.xlu0 %v138_v23 }
  0xe6   :  { %35 = vadd.xlane.f32.xlu0 %v34_v30 }
 0x130   :  { %v50_v31 = vpop.xlane.xlu1 %49 }
 0x16f   :  { %v140_v24 = vpop.xlane.xlu0 %139 }
 0x170   :  { %v141_v25 = vsub.f32 %v135_v21, %v140_v24 }
 0x172   :  { %v142_v26 = vmul.f32 1.442695, %v141_v25 }
 0x173   :  { %v36_v43 = vpop.xlane.xlu0 %35 }
 0x174   :  { %452 = vpow2.f32 %v142_v26  ;;  %v37_v44 = vmax.f32 %v36_v43, 1.0 }
 0x175   :  { %454 = vrcp.f32 %v50_v31 }
 0x17e   :  { %v453_v27 = vpop.eup %452 }
 0x17f   :  { %v144_v28 = vsel %vm41_vm1, %v453_v27, 0.0  ;;  %v455_v33 = vpop.eup %454 }
 0x180   :  { %145 = vadd.xlane.f32.xlu1 %v144_v28  ;;  %v52_v35 = vmul.f32 %v455_v33, %v451_v17 }
 0x20d   :  { %v146_v32 = vpop.xlane.xlu1 %145 }
 0x20e   :  { %456 = vrcp.f32 %v146_v32 }
 0x20f   :  { %458 = vrcp.f32 %v37_v44 }
 0x218   :  { %v457_v34 = vpop.eup %456 }
 0x219   :  { %v148_v36 = vmul.f32 %v457_v34, %v453_v27  ;;  %v459_v46 = vpop.eup %458 }
 0x21a   :  { %v40_v47 = vmul.f32 %v459_v46, %v38_v45 }
 0x21b   :  { %v149_v37 = vsub.f32 %v148_v36, %v52_v35 }
 0x21d   :  { %v151_v38 = vmul.f32 0.5, %v149_v37 }
 0x21f   :  { %413 = vmatmul.mubr.msk.f32.vlgmr.msra.gmra.mrb[0].mxu1 %vm152_vm3, %v151_v38 }
 0x2f2   :  { %v234_v39 = vpop.f32.mrb[0].mxu1 }
 0x2f3   :  { %v238_v40 = vand.u32 2147483647, %v234_v39  ;;  %v414_v41 = vpop.f32.mrb[1].mxu1 }
 0x2f5   :  { %v240_v42 = vsel %vm239_vm6, %v238_v40, -inf }
 0x2f6   :  { %241 = vmax.xlane.f32.xlu1 %v240_v42 }
 0x383   :  { %v242_v48 = vpop.xlane.xlu1 %241 }
 0x384   :  { %v243_v49 = vmul.f32 %v242_v48, %v40_v47 }
 0x386   :  { %v244_v50 = vadd.f32 1e-08, %v243_v49 }
 0x388   :  { %460 = vrcp.f32 %v244_v50 }
 0x392   :  { %v461_v51 = vpop.eup %460 }
 0x393   :  { %v246_v52 = vmul.f32 %v461_v51, %v40_v47 }
 0x395   :  { %v247_v53 = vmul.f32 %v246_v52, %v24_v29 }
 0x397   :  { %v248_v54 = vsel %vm33_vm5, %v247_v53, 0.0 }
 0x398   :  { %249 = vadd.xlane.f32.xlu0 %v248_v54 }
 0x425   :  { %v250_v55 = vpop.xlane.xlu0 %249 }
 0x426   :  { %v251_v56 = vmul.f32 %v459_v46, %v250_v55 }
 0x428   :  { %v252_v57 = vmul.f32 %v251_v56, %v234_v39 }
 0x42a   :  { %v253_v58 = vmul.f32 2.0, %v252_v57 }
 0x42c   :  { %v254_v59 = vadd.f32 %v253_v58, %v554_v11 }
 0x42e   :  { %424 = vmatmul.mubr.msk.f32.vlgmr.msra.gmra.mrb[2].mxu0 %vm64_vm2, %v254_v59 }
 0x501   :  { %v324_v60 = vpop.f32.mrb[2].mxu0 }
 0x502   :  { %v325_v61 = vadd.f32 %v370_v19, %v324_v60  ;;  %v425_v62 = vpop.f32.mrb[3].mxu0 }
 0x504   :  { %v328_v63 = vsel %vm41_vm1, %v325_v61, -inf }
 0x505   :  { %329 = vmax.xlane.f32.xlu1 %v328_v63 }
 0x592   :  { %v330_v0 = vpop.xlane.xlu1 %329 }
 0x593   :  { %v331_v1 = vsub.f32 %v325_v61, %v330_v0 }
 0x595   :  { %v332_v2 = vmul.f32 1.442695, %v331_v1 }
 0x597   :  { %462 = vpow2.f32 %v332_v2 }
 0x598   :  { %464 = vlog2.f32 %v50_v31 }
 0x5a1   :  { %v463_v3 = vpop.eup %462 }
 0x5a2   :  { %v334_v4 = vsel %vm41_vm1, %v463_v3, 0.0  ;;  %v465_v6 = vpop.eup %464 }
 0x5a3   :  { %335 = vadd.xlane.f32.xlu0 %v334_v4  ;;  %v54_v7 = vmul.f32 0.6931472, %v465_v6 }
 0x5a5   :  { %v55_v11 = vsub.f32 %v560_v15, %v54_v7 }
 0x630   :  { %v336_v5 = vpop.xlane.xlu0 %335 }
 0x631   :  { %466 = vlog2.f32 %v336_v5 }
 0x63b   :  { %v467_v8 = vpop.eup %466 }
 0x63c   :  { %v338_v9 = vmul.f32 0.6931472, %v467_v8 }
 0x63e   :  { %v339_v10 = vsub.f32 %v331_v1, %v338_v9 }
 0x640   :  { %v340_v12 = vsub.f32 %v55_v11, %v339_v10 }
 0x642   :  { %v341_v13 = vmul.f32 %v340_v12, %v52_v35 }
 0x644   :  { %v342_v14 = vsel %vm41_vm1, %v341_v13, 0.0 }
 0x645   :  { %343 = vadd.xlane.f32.xlu1 %v342_v14 }
 0x6d2   :  { %v344_v16 = vpop.xlane.xlu1 %343 }
 0x6d3   :  { %v346_v17 = vsel %vm345_vm7, %v344_v16, 0.0 }
 0x6d4   :  { %v347_v18 = vrot.slane %v346_v17, 4 }
 0x6d6   :  { %v348_v19 = vadd.f32 %v347_v18, %v346_v17 }
 0x6d8   :  { %v349_v20 = vrot.slane %v348_v19, 2 }
 0x6da   :  { %v350_v21 = vadd.f32 %v349_v20, %v348_v19 }
 0x6dc   :  { %v351_v22 = vrot.slane %v350_v21, 1 }
 0x6de   :  { %v352_v23 = vadd.f32 %v351_v22, %v350_v21 }
 0x6e0   :  { %v353_v24 = vmul.f32 0.5, %v352_v23 }
 0x6e2   :  { %355 = vst.msk [vmem:[#allocation2] sm:$0x1] %vm354_vm8, %v353_v24 }
 0x6e3   :  { %479 = shalt.err (!%p476_p4)
}
 0x6e4   :  { %s480_s15 = scalar_lea.hbm %s601_s6, 16 }
 0x6e5   :  { %p481_p5 = scmp.ne.s32.totalorder %s601_s6, %s480_s15  ;;  %p484_p6 = scmp.lt.u32.totalorder %s480_s15, %s601_s6 }
 0x6e7   :  { %p486_p7 = pnand %p484_p6, %p481_p5 }
 0x6e9   :  { %489 = shalt.err (!%p486_p7)
}
 0x6ea   :  { %365 = dma.vmem_to_hbm [thread:$0]  %s363_s10, 16, %s601_s6, [#allocation3]  }
 0x6eb   :  { %490 = dma.done.wait [#allocation3], 16  }
 0x6ec   :  { %491 = vsyncadd [#allocation3], 4294967280 }
 0x6ed   :  { %369 = vsyncpa [#allocation3], 1 }

</bundles_post_ra>
